<compile_context>
chip_gen: v5e
topology: v5e:2x2
jax: 0.10.0
libtpu: 0.0.40
codegen_flags: <defaults>
</compile_context>

<pallas_src>
import functools

import jax
import jax.numpy as jnp
from jax import lax
from jax.experimental import pallas as pl
from jax.experimental.pallas import tpu as pltpu

KMAX = 7            # largest branch kernel
PMAX = KMAX // 2    # "same" padding of the packed 7-tap conv
HALO = 128          # lane-aligned left offset of the main tile inside xwin
LANE = 128
BRANCH_K = (1, 3, 5, 7)
BRANCH_P = (0, 1, 2, 3)


def _res_branch_conv1d_kernel(x_ref, halo_ref, w_ref, o_ref, xwin, *maybe_stack,
                              tc, tl, c_in, use_im2col):
    """One (sample n, length-tile l, cout-tile c) grid step.

    x_ref    : (1, C, TL)         f32   main tile (conv input + residual), pipelined
    halo_ref : (1, 1, C, 2*PMAX)  f32   [left | right] halo columns of this tile
    w_ref    : (C, KMAX*C)        bf16  full folded weights (resident, fetched once)
    o_ref    : (1, TC, TL)              output tile
    xwin     : (C, TL + 2*HALO)   bf16  scratch: tile + halos, contiguous
    stack    : (KMAX*C, TL)       bf16  scratch: im2col stack (im2col path only)
    """
    C = c_in
    c = pl.program_id(2)
    if use_im2col:
        (stack,) = maybe_stack

    # ---- staging: once per (n, l); reused across all cout tiles.  The cout
    # axis is "arbitrary" (sequential), so c == 0 always runs first. -----------
    @pl.when(c == 0)
    def _stage():
        xwin[:, pl.ds(HALO, tl)] = x_ref[0].astype(jnp.bfloat16)
        halo = halo_ref[0, 0, :, :].astype(jnp.bfloat16)        # (C, 2*PMAX)
        xwin[:, pl.ds(HALO - PMAX, PMAX)] = halo[:, :PMAX]
        xwin[:, pl.ds(HALO + tl, PMAX)] = halo[:, PMAX:]
        if use_im2col:
            # im2col: the 7 shifted windows stacked along the contraction dim.
            # The center tap (t == PMAX) starts at HALO and is 128-aligned.
            for t in range(KMAX):
                stack[t * C:(t + 1) * C, :] = xwin[:, pl.ds(HALO - PMAX + t, tl)]

    # ---- per-cout-tile compute -----------------------------------------------
    if tc == C:
        w_blk = w_ref[...]
        x_res = x_ref[0]
    else:
        row0 = pl.multiple_of(c * tc, 8)
        w_blk = w_ref[pl.ds(row0, tc), :]
        x_res = x_ref[0, pl.ds(row0, tc), :]

    if use_im2col:
        # One big-K MXU matmul (bf16 x bf16 -> f32): best on v5e/v6e (MRF).
        y = jnp.dot(w_blk, stack[...], preferred_element_type=jnp.float32)
    else:
        # Per-tap accumulation: best on v7x (MRB accumulates in place) and it
        # skips the KMAX*C*TL im2col store/reload VMEM traffic entirely.
        y = jnp.dot(w_blk[:, 0:C], xwin[:, pl.ds(HALO - PMAX, tl)],
                    preferred_element_type=jnp.float32)
        for t in range(1, KMAX):
            y = y + jnp.dot(w_blk[:, t * C:(t + 1) * C],
                            xwin[:, pl.ds(HALO - PMAX + t, tl)],
                            preferred_element_type=jnp.float32)

    # Residual add in f32 (exact), straight from the f32 input block.
    o_ref[0, :, :] = (x_res.astype(jnp.float32) + y).astype(o_ref.dtype)


def _build_halos(x_in, n_l, tl):
    """(N, n_l, C, 2*PMAX): the PMAX columns immediately left / right of every
    length tile (zeros at the sequence edges).  Only 6 columns per tile."""
    N, C, _ = x_in.shape
    zero = jnp.zeros((N, C, PMAX), x_in.dtype)
    tiles = []
    for l in range(n_l):
        left = zero if l == 0 else x_in[:, :, l * tl - PMAX:l * tl]
        right = (zero if l == n_l - 1
                 else x_in[:, :, (l + 1) * tl:(l + 1) * tl + PMAX])
        tiles.append(jnp.concatenate([left, right], axis=-1))
    return jnp.stack(tiles, axis=1)


def res_branch_conv1d(x, w_packed, *, l_tile=None, cout_tile=None,
                      use_im2col=True, out_dtype=None):
    """x: (N, C, L) float32, w_packed: (C, C, KMAX)  ->  (N, C, L)."""
    N, C, L = x.shape
    assert w_packed.shape == (C, C, KMAX), "Cout must equal Cin for the residual"

    # Length tile (multiple of 128); Lp is padded up to a multiple of TL.
    if l_tile is None:
        l_tile = 512 if L >= 1024 else (256 if L >= 256 else 128)
    TL = int(l_tile)
    assert TL % LANE == 0
    Lp = ((L + TL - 1) // TL) * TL
    x_in = x if Lp == L else jnp.pad(x, ((0, 0), (0, 0), (0, Lp - L)))
    n_l = Lp // TL

    # Cout tile (divides C).  With resident weights NC=1 is best for typical C.
    if cout_tile is None:
        cout_tile = C if (C <= 512 or C % 256 != 0) else 256
    TC = int(cout_tile)
    assert C % TC == 0 and (TC == C or TC % 8 == 0)
    NC = C // TC

    out_dtype = x.dtype if out_dtype is None else jnp.dtype(out_dtype)

    # Fold the 7 taps into the contraction dim: W_fold[o, t*C + i] = w[o, i, t].
    w_fold = jnp.transpose(w_packed, (0, 2, 1)).reshape(C, KMAX * C)
    w_fold = w_fold.astype(jnp.bfloat16)    # bf16 MXU operands, f32 accumulate

    halos = _build_halos(x_in, n_l, TL)      # (N, n_l, C, 2*PMAX), tiny

    kernel = functools.partial(
        _res_branch_conv1d_kernel,
        tc=TC, tl=TL, c_in=C, use_im2col=use_im2col)

    scratch = [pltpu.VMEM((C, TL + 2 * HALO), jnp.bfloat16)]
    if use_im2col:
        scratch.append(pltpu.VMEM((KMAX * C, TL), jnp.bfloat16))

    # VMEM budget: residency scales with TL (not Lp) now.
    vmem_need = (2 * C * TL * x.dtype.itemsize          # x blocks (double-buffered)
                 + 2 * TC * TL * out_dtype.itemsize     # out blocks
                 + 2 * C * KMAX * C * 2                 # resident folded weights
                 + 2 * C * 2 * PMAX * x.dtype.itemsize  # halo blocks
                 + C * (TL + 2 * HALO) * 2              # xwin scratch (bf16)
                 + (KMAX * C * TL * 2 if use_im2col else 0))   # im2col scratch
    try:
        # Clamp to this generation's real VMEM (64 MiB/TC on v7x, 128 MiB v5e/v6e).
        phys_vmem = int(pltpu.get_tpu_info().vmem_capacity_bytes)
    except Exception:  # conservative fallback that fits every generation
        phys_vmem = 64 * 2**20
    vmem_limit = int(min(max(int(1.25 * vmem_need) + (4 << 20), 32 << 20),
                         phys_vmem - (8 << 20)))

    out = pl.pallas_call(
        kernel,
        out_shape=jax.ShapeDtypeStruct((N, C, Lp), out_dtype),
        grid_spec=pltpu.PrefetchScalarGridSpec(
            num_scalar_prefetch=0,
            # cout innermost so staging / im2col is built once per (n, l) and
            # reused across cout tiles.
            grid=(N, n_l, NC),
            in_specs=[
                pl.BlockSpec((1, C, TL), lambda n, l, c: (n, 0, l)),
                pl.BlockSpec((1, 1, C, 2 * PMAX), lambda n, l, c: (n, l, 0, 0)),
                # Full folded weight, constant block index -> single DMA ever.
                # TODO(synk): pipeline_mode=pl.Buffered(1) for very large C.
                pl.BlockSpec((C, KMAX * C), lambda n, l, c: (0, 0)),
            ],
            out_specs=pl.BlockSpec((1, TC, TL), lambda n, l, c: (n, c, l)),
            scratch_shapes=scratch,
        ),
        compiler_params=pltpu.CompilerParams(
            dimension_semantics=("parallel", "parallel", "arbitrary"),
            vmem_limit_bytes=vmem_limit,
        ),
    )(x_in, halos, w_fold)

    return out if Lp == L else out[:, :, :L]


def make_packed_weights(key, channels):
    """Deterministically init 4 Conv1d weights (C/4, channels, k_b) and pack
    them (centered, zero-padded) into a single (channels, channels, KMAX)."""
    assert channels % 4 == 0
    Cb = channels // 4
    w_packed = jnp.zeros((channels, channels, KMAX), jnp.float32)
    keys = jax.random.split(key, 4)
    for b, (k, p) in enumerate(zip(BRANCH_K, BRANCH_P)):
        wb = jax.random.normal(keys[b], (Cb, channels, k), jnp.float32) * 0.1
        start_t = PMAX - p  # center the k-tap kernel inside KMAX taps
        w_packed = w_packed.at[b * Cb:(b + 1) * Cb, :,
                               start_t:start_t + k].set(wb)
    return w_packed


def reference_forward(x, w_packed):
    """Plain-JAX f32 reference: packed 7-tap same conv + residual."""
    out = lax.conv_general_dilated(
        x, w_packed,
        window_strides=(1,),
        padding=((PMAX, PMAX),),
        dimension_numbers=("NCW", "OIW", "NCW"),
    )
    return x + out


if __name__ == "__main__":
    root = jax.random.PRNGKey(0)

    cases = [
        dict(N=2, C=16, L=128),                    # single length tile, NC=1
        dict(N=2, C=32, L=320),                    # multi-tile halos + L padding
        dict(N=1, C=32, L=384, cout_tile=16),      # NC=2: staging reuse across cout tiles
        dict(N=2, C=32, L=320, use_im2col=False),  # per-tap (v7x MRB) path
    ]
    for i, cfg in enumerate(cases):
        N, C, L = cfg.pop("N"), cfg.pop("C"), cfg.pop("L")
        kx, kw = jax.random.split(jax.random.fold_in(root, i))
        x = jax.random.normal(kx, (N, C, L), jnp.float32)
        w_packed = make_packed_weights(kw, C)

        y = jax.block_until_ready(res_branch_conv1d(x, w_packed, **cfg))
        y_ref = reference_forward(x, w_packed)

        assert y.shape == x.shape
        # bf16 MXU operands (f32 accumulate, exact f32 residual) -> relaxed tol.
        assert jnp.allclose(y, y_ref, atol=5e-2, rtol=5e-2), f"mismatch, case {i}"

    print("KERNEL_OK")
</pallas_src>

<mosaic_0001>
module attributes {stable_mosaic.version = 11 : i64} {
  func.func @_res_branch_conv1d_kernel(%arg0: i32, %arg1: i32, %arg2: i32, %arg3: memref<1x16x128xf32, #tpu.memory_space<vmem>>, %arg4: memref<1x1x16x6xf32, #tpu.memory_space<vmem>>, %arg5: memref<16x112xbf16, #tpu.memory_space<vmem>>, %arg6: memref<1x16x128xf32, #tpu.memory_space<vmem>>, %arg7: memref<16x384xbf16, #tpu.memory_space<vmem>>, %arg8: memref<112x128xbf16, #tpu.memory_space<vmem>>) attributes {dimension_semantics = [#tpu.dimension_semantics<parallel>, #tpu.dimension_semantics<parallel>, #tpu.dimension_semantics<arbitrary>], iteration_bounds = array<i64: 2, 1, 1>, scalar_prefetch = 0 : i64, scratch_operands = 2 : i64, tpu.core_type = #tpu.core_type<tc>, window_params = [{transform_indices = @transform_0, window_bounds = array<i64: 1, 16, 128>}, {transform_indices = @transform_1, window_bounds = array<i64: 1, 1, 16, 6>}, {pipeline_mode = #tpu.pipeline_mode<synchronous>, transform_indices = @transform_2, window_bounds = array<i64: 16, 112>}, {transform_indices = @transform_3, window_bounds = array<i64: 1, 16, 128>}]} {
    %c0_i32 = arith.constant 0 : i32
    %0 = arith.cmpi eq, %arg2, %c0_i32 : i32
    %1 = arith.extui %0 : i1 to i32
    %c0_i32_0 = arith.constant 0 : i32
    %2 = arith.cmpi ne, %1, %c0_i32_0 : i32
    scf.if %2 {
      %c0_10 = arith.constant 0 : index
      %c0_11 = arith.constant 0 : index
      %c0_12 = arith.constant 0 : index
      %12 = vector.load %arg3[%c0_10, %c0_11, %c0_12] : memref<1x16x128xf32, #tpu.memory_space<vmem>>, vector<1x16x128xf32>
      %13 = vector.shape_cast %12 : vector<1x16x128xf32> to vector<16x128xf32>
      %14 = arith.truncf %13 : vector<16x128xf32> to vector<16x128xbf16>
      %c0_13 = arith.constant 0 : index
      %c128 = arith.constant 128 : index
      %15 = vector.load %arg7[%c0_13, %c128] : memref<16x384xbf16, #tpu.memory_space<vmem>>, vector<16x128xbf16>
      tpu.vector_store %arg7[%c0_13, %c128], %14 {strides = array<i32>} : memref<16x384xbf16, #tpu.memory_space<vmem>>, vector<16x128xbf16>,
      %c0_14 = arith.constant 0 : index
      %c0_15 = arith.constant 0 : index
      %c0_16 = arith.constant 0 : index
      %c0_17 = arith.constant 0 : index
      %16 = vector.load %arg4[%c0_14, %c0_15, %c0_16, %c0_17] : memref<1x1x16x6xf32, #tpu.memory_space<vmem>>, vector<1x1x16x6xf32>
      %17 = vector.shape_cast %16 : vector<1x1x16x6xf32> to vector<16x6xf32>
      %18 = arith.truncf %17 : vector<16x6xf32> to vector<16x6xbf16>
      %19 = vector.extract_strided_slice %18 {offsets = [0, 0], sizes = [16, 3], strides = [1, 1]} : vector<16x6xbf16> to vector<16x3xbf16>
      %c0_18 = arith.constant 0 : index
      %c125 = arith.constant 125 : index
      %20 = vector.load %arg7[%c0_18, %c125] : memref<16x384xbf16, #tpu.memory_space<vmem>>, vector<16x3xbf16>
      tpu.vector_store %arg7[%c0_18, %c125], %19 {strides = array<i32>} : memref<16x384xbf16, #tpu.memory_space<vmem>>, vector<16x3xbf16>,
      %21 = vector.extract_strided_slice %18 {offsets = [0, 3], sizes = [16, 3], strides = [1, 1]} : vector<16x6xbf16> to vector<16x3xbf16>
      %c0_19 = arith.constant 0 : index
      %c256 = arith.constant 256 : index
      %22 = vector.load %arg7[%c0_19, %c256] : memref<16x384xbf16, #tpu.memory_space<vmem>>, vector<16x3xbf16>
      tpu.vector_store %arg7[%c0_19, %c256], %21 {strides = array<i32>} : memref<16x384xbf16, #tpu.memory_space<vmem>>, vector<16x3xbf16>,
      %c0_20 = arith.constant 0 : index
      %c125_21 = arith.constant 125 : index
      %23 = vector.load %arg7[%c0_20, %c125_21] : memref<16x384xbf16, #tpu.memory_space<vmem>>, vector<16x128xbf16>
      %c0_22 = arith.constant 0 : index
      %c0_23 = arith.constant 0 : index
      %24 = vector.load %arg8[%c0_22, %c0_23] : memref<112x128xbf16, #tpu.memory_space<vmem>>, vector<16x128xbf16>
      tpu.vector_store %arg8[%c0_22, %c0_23], %23 {strides = array<i32>} : memref<112x128xbf16, #tpu.memory_space<vmem>>, vector<16x128xbf16>,
      %c0_24 = arith.constant 0 : index
      %c126 = arith.constant 126 : index
      %25 = vector.load %arg7[%c0_24, %c126] : memref<16x384xbf16, #tpu.memory_space<vmem>>, vector<16x128xbf16>
      %c16 = arith.constant 16 : index
      %c0_25 = arith.constant 0 : index
      %26 = vector.load %arg8[%c16, %c0_25] : memref<112x128xbf16, #tpu.memory_space<vmem>>, vector<16x128xbf16>
      tpu.vector_store %arg8[%c16, %c0_25], %25 {strides = array<i32>} : memref<112x128xbf16, #tpu.memory_space<vmem>>, vector<16x128xbf16>,
      %c0_26 = arith.constant 0 : index
      %c127 = arith.constant 127 : index
      %27 = vector.load %arg7[%c0_26, %c127] : memref<16x384xbf16, #tpu.memory_space<vmem>>, vector<16x128xbf16>
      %c32 = arith.constant 32 : index
      %c0_27 = arith.constant 0 : index
      %28 = vector.load %arg8[%c32, %c0_27] : memref<112x128xbf16, #tpu.memory_space<vmem>>, vector<16x128xbf16>
      tpu.vector_store %arg8[%c32, %c0_27], %27 {strides = array<i32>} : memref<112x128xbf16, #tpu.memory_space<vmem>>, vector<16x128xbf16>,
      %c0_28 = arith.constant 0 : index
      %c128_29 = arith.constant 128 : index
      %29 = vector.load %arg7[%c0_28, %c128_29] : memref<16x384xbf16, #tpu.memory_space<vmem>>, vector<16x128xbf16>
      %c48 = arith.constant 48 : index
      %c0_30 = arith.constant 0 : index
      %30 = vector.load %arg8[%c48, %c0_30] : memref<112x128xbf16, #tpu.memory_space<vmem>>, vector<16x128xbf16>
      tpu.vector_store %arg8[%c48, %c0_30], %29 {strides = array<i32>} : memref<112x128xbf16, #tpu.memory_space<vmem>>, vector<16x128xbf16>,
      %c0_31 = arith.constant 0 : index
      %c129 = arith.constant 129 : index
      %31 = vector.load %arg7[%c0_31, %c129] : memref<16x384xbf16, #tpu.memory_space<vmem>>, vector<16x128xbf16>
      %c64 = arith.constant 64 : index
      %c0_32 = arith.constant 0 : index
      %32 = vector.load %arg8[%c64, %c0_32] : memref<112x128xbf16, #tpu.memory_space<vmem>>, vector<16x128xbf16>
      tpu.vector_store %arg8[%c64, %c0_32], %31 {strides = array<i32>} : memref<112x128xbf16, #tpu.memory_space<vmem>>, vector<16x128xbf16>,
      %c0_33 = arith.constant 0 : index
      %c130 = arith.constant 130 : index
      %33 = vector.load %arg7[%c0_33, %c130] : memref<16x384xbf16, #tpu.memory_space<vmem>>, vector<16x128xbf16>
      %c80 = arith.constant 80 : index
      %c0_34 = arith.constant 0 : index
      %34 = vector.load %arg8[%c80, %c0_34] : memref<112x128xbf16, #tpu.memory_space<vmem>>, vector<16x128xbf16>
      tpu.vector_store %arg8[%c80, %c0_34], %33 {strides = array<i32>} : memref<112x128xbf16, #tpu.memory_space<vmem>>, vector<16x128xbf16>,
      %c0_35 = arith.constant 0 : index
      %c131 = arith.constant 131 : index
      %35 = vector.load %arg7[%c0_35, %c131] : memref<16x384xbf16, #tpu.memory_space<vmem>>, vector<16x128xbf16>
      %c96 = arith.constant 96 : index
      %c0_36 = arith.constant 0 : index
      %36 = vector.load %arg8[%c96, %c0_36] : memref<112x128xbf16, #tpu.memory_space<vmem>>, vector<16x128xbf16>
      tpu.vector_store %arg8[%c96, %c0_36], %35 {strides = array<i32>} : memref<112x128xbf16, #tpu.memory_space<vmem>>, vector<16x128xbf16>,
    } else {
    }
    %c0 = arith.constant 0 : index
    %c0_1 = arith.constant 0 : index
    %3 = vector.load %arg5[%c0, %c0_1] : memref<16x112xbf16, #tpu.memory_space<vmem>>, vector<16x112xbf16>
    %c0_2 = arith.constant 0 : index
    %c0_3 = arith.constant 0 : index
    %c0_4 = arith.constant 0 : index
    %4 = vector.load %arg3[%c0_2, %c0_3, %c0_4] : memref<1x16x128xf32, #tpu.memory_space<vmem>>, vector<1x16x128xf32>
    %5 = vector.shape_cast %4 : vector<1x16x128xf32> to vector<16x128xf32>
    %c0_5 = arith.constant 0 : index
    %c0_6 = arith.constant 0 : index
    %6 = vector.load %arg8[%c0_5, %c0_6] : memref<112x128xbf16, #tpu.memory_space<vmem>>, vector<112x128xbf16>
    %cst = arith.constant dense<0.000000e+00> : vector<16x128xf32>
    %7 = tpu.matmul %3, %6, %cst {dimension_numbers = #tpu.dot_dimension_numbers<[1], [0], [0], [1], [0, 0, 1, 1], [], []>} : vector<16x112xbf16>, vector<112x128xbf16>, vector<16x128xf32> -> vector<16x128xf32>
    %8 = arith.addf %5, %7 : vector<16x128xf32>
    %c0_7 = arith.constant 0 : index
    %c0_8 = arith.constant 0 : index
    %c0_9 = arith.constant 0 : index
    %9 = vector.load %arg6[%c0_7, %c0_8, %c0_9] : memref<1x16x128xf32, #tpu.memory_space<vmem>>, vector<1x16x128xf32>
    %10 = vector.shape_cast %9 : vector<1x16x128xf32> to vector<16x128xf32>
    %11 = vector.shape_cast %8 : vector<16x128xf32> to vector<1x16x128xf32>
    tpu.vector_store %arg6[%c0_7, %c0_8, %c0_9], %11 {strides = array<i32>} : memref<1x16x128xf32, #tpu.memory_space<vmem>>, vector<1x16x128xf32>,
    return
  }
  func.func @transform_0(%arg0: i32, %arg1: i32, %arg2: i32) -> (i32, i32, i32) {
    %c0_i32 = arith.constant 0 : i32
    %c0_i32_0 = arith.constant 0 : i32
    return %arg0, %c0_i32, %arg1 : i32, i32, i32
  }
  func.func @transform_1(%arg0: i32, %arg1: i32, %arg2: i32) -> (i32, i32, i32, i32) {
    %c0_i32 = arith.constant 0 : i32
    %c0_i32_0 = arith.constant 0 : i32
    %c0_i32_1 = arith.constant 0 : i32
    return %arg0, %arg1, %c0_i32, %c0_i32_0 : i32, i32, i32, i32
  }
  func.func @transform_2(%arg0: i32, %arg1: i32, %arg2: i32) -> (i32, i32) {
    %c0_i32 = arith.constant 0 : i32
    %c0_i32_0 = arith.constant 0 : i32
    %c0_i32_1 = arith.constant 0 : i32
    return %c0_i32, %c0_i32_0 : i32, i32
  }
  func.func @transform_3(%arg0: i32, %arg1: i32, %arg2: i32) -> (i32, i32, i32) {
    %c0_i32 = arith.constant 0 : i32
    return %arg0, %arg2, %arg1 : i32, i32, i32
  }
}

</mosaic_0001>

<bundles_post_ra>
// kernel: tpu_custom_call.1
= control target key start
LH: loop header
LB: loop body
LE: loop exit
PB: predicated region body
PF: predicated region fallthrough
CT: control target
= control target key end

     0   :  { %8 = vsyncpa [#allocation5], 0  ;;  %s936_s0 = inlined_call_operand.vmem [shape: f32[2,16,128], index: 0, kind: input, shape index: {}]   ;;  %s937_s1 = inlined_call_operand.vmem [shape: f32[2,1,16,6], index: 1, kind: input, shape index: {}]   ;;  %s938_s2 = inlined_call_operand.vmem [shape: bf16[16,112], index: 2, kind: input, shape index: {}]   ;;  %s939_s3 = inlined_call_operand.hbm [shape: f32[2,16,128], index: 3, kind: output, shape index: {}]  }
   0x1   :  { %10 = vsyncpa [#allocation5 + $0x1], 0  ;;  %s813_s12 = smov 0   ;;  %s815_s13 = smov 0  }
   0x2   :  { %s817_s14 = smov 0   ;;  %s819_s15 = smov 0  }
   0x3   :  { %s821_s16 = smov 0   ;;  %s823_s17 = smov 0  }
   0x4 LB: > { %s583_s18 = sadd.s32 4294967295, %s783_s17   ;;  %s584_s19 = sadd.s32 4294967294, %s783_s17   ;;  %s783_s17 = sphi %s823_s17, %s16_s17   ;;  %s779_s16 = sphi %s821_s16, %s946_s16   ;;  %s775_s15 = sphi %s819_s15, %s945_s15   ;;  %s771_s14 = sphi %s817_s14, %s944_s14   ;;  %s767_s13 = sphi %s815_s13, %s943_s13   ;;  %s763_s12 = sphi %s813_s12, %s942_s12  }
   0x5   : > { %s35_s20 = sadd.s32 1, %s779_s16  ;;  %s123_s21 = sadd.s32 1, %s771_s14 }
   0x6   : > { %p37_p0 = scmp.ge.s32.totalorder %s35_s20, 2  ;;  %p133_p1 = scmp.ne.s32.totalorder %s771_s14, %s767_s13 }
   0x7   : > { %p134_p2 = scmp.eq.s32.totalorder %s583_s18, 1  ;;  %p139_p3 = scmp.ne.s32.totalorder %s767_s13, %s763_s12 }
   0x8   : > { %s948_s20 = smov (%p37_p0, %s35_s20), 0  ;;  %p140_p5 = scmp.eq.s32.totalorder %s584_s19, 1 }
   0x9   : > { %p853_p4 = por %p134_p2, %p133_p1  ;;  %s116_s23 = ssub.s32 %s779_s16, %s948_s20 }
   0xa   : > { %p587_p6 = scmp.ge.s32.totalorder %s783_s17, 1  ;;  %p121_p7 = scmp.eq.s32.totalorder %s116_s23, 0 }
   0xb   : > { %p860_p8 = por %p140_p5, %p139_p3  ;;  %p184_p9 = scmp.lt.s32.totalorder %s783_s17, 3 }
   0xc   : > { %s866_s25 = scalar_select %p121_p7, %s771_s14, %s123_s21  }
   0xd   : > { %p185_p10 = pnand %p587_p6, %p184_p9 }
   0xe   : > { %p220_p11 = scmp.lt.s32.totalorder (!%p185_p10), %s775_s15, 1  ;;  %s785_s7 = smov (!%p185_p10), 125  }
   0xf   : > { %188 = sbr.rel (%p185_p10) target bundleno = 452 (0x1c4), region = 32  ;;  %s786_s8 = smov (!%p185_p10), 126  }
  0x10   : > { %s787_s9 = smov (!%p185_p10), 127   ;;  %s788_s10 = smov (!%p185_p10), 1  }
  0x11   : > { %s789_s11 = smov (!%p185_p10), 3   ;;  %s790_s18 = smov (!%p185_p10), 2  }
  0x12   : > { %s217_s23 = sand.u32 (!%p185_p10), 1, %s767_s13  }
  0x14   : > { %s221_s26 = scalar_select %p220_p11, %s775_s15, 1  ;;  %vm261_vm0 = vcmask 1044456   ;;  %vm264_vm1 = vcmask 19456   ;;  %vm349_vm2 = vcmask 1031168   ;;  %vm311_vm3 = vcmask 7168   ;;  %v633_v59 = vld [vmem:[%s938_s2] sm:$0xff] }
  0x15   : > { %vm366_vm4 = vcmask 1022976   ;;  %vm294_vm5 = vcmask 15360   ;;  %vm332_vm6 = vcmask 1039360   ;;  %vm277_vm7 = vcmask 23552  }
  0x16   : > { %s631_s27 = sshll.u32 %s221_s26, 4  ;;  %vm438_vm8 = vcmask 916480   ;;  %s588_s26 = sshll.u32 %s217_s23, 4 }
  0x17   : > { %s236_s30 = scalar_lea.vmem %s937_s1, %s631_s27  ;;  %s227_s6 = scalar_lea.vmem %s936_s0, %s631_s27 }
  0x18   : > { %v249_v0 = vld [vmem:[%s236_s30] sm:$0xff]  ;;  %v878_v3 = vld [vmem:[%s227_s6 + $0x8] sm:$0xff]  ;;  %s641_s27 = sshll.u32 %s775_s15, 4  ;;  %s219_s28 = scalar_lea.vmem [#allocation4], %s588_s26 }
  0x19   : > { %v876_v1 = vld [vmem:[%s227_s6] sm:$0xff]  ;;  %v251_v2 = vpack.c.bf16 %v249_v0, %v249_v0  ;;  %v246_v5 = vpack.c.bf16 %v878_v3, %v878_v3  ;;  %v250_v6 = vld [vmem:[%s236_s30 + $0x8] sm:$0xff]  ;;  %s475_s4 = scalar_lea.hbm %s939_s3, %s641_s27  ;;  %s476_s5 = sshll.u32 %s219_s28, 4  ;;  %s477_s5 = int_to_ptr.vmem [resolvable:$true] %s476_s5 }
  0x1a   : > { %v245_v4 = vpack.c.bf16 %v876_v1, %v876_v1  ;;  %v252_v7 = vpack.c.bf16 %v250_v6, %v250_v6  ;;  %s478_s6 = sshll.u32 %s475_s4, 4  ;;  %s479_s6 = int_to_ptr.hbm [resolvable:$true] %s478_s6 }
  0x1b   : > { %255 = vrot.lane.b32.xlu0 %v251_v2, %s785_s7  ;;  %248 = vst [vmem:[#allocation2 + $0x10] sm:$0xf] %v246_v5 }
  0x1c   : > { %247 = vst [vmem:[#allocation2 + $0x4] sm:$0xf] %v245_v4 }
  0x22   : > { %v319_v23 = vld [vmem:[#allocation2 + $0x10] sm:$0xf] }
  0x23   : > { %257 = vrot.lane.b32.xlu0 %v252_v7, %s785_s7  ;;  %v318_v22 = vld [vmem:[#allocation2 + $0x4] sm:$0xf]  ;;  %321 = vst [vmem:[#allocation3 + $0x1c] sm:$0xf] %v319_v23 }
  0x24   : > { %320 = vst [vmem:[#allocation3 + $0x18] sm:$0xf] %v318_v22 }
  0x2b   : > { %v637_v52 = vld [vmem:[#allocation3 + $0x18] sm:$0xff] }
  0x8d   : > { %v256_v8 = vpop.permute.xlu0 %255 }
  0x8e   : > { %262 = vst.msk [vmem:[#allocation2] sm:$0xf] %vm261_vm0, %v256_v8 }
  0x8f   : > { %265 = vst.msk [vmem:[#allocation2 + $0x8] sm:$0xf] %vm264_vm1, %v256_v8 }
  0x95   : > { %v258_v9 = vpop.permute.xlu0 %257  ;;  %v301_v13 = vld [vmem:[#allocation2] sm:$0xff] }
  0x96   : > { %263 = vst.msk [vmem:[#allocation2 + $0xc] sm:$0xf] %vm261_vm0, %v258_v9  ;;  %v356_v10 = vld [vmem:[#allocation2 + $0x4] sm:$0xff] }
  0x97   : > { %266 = vst.msk [vmem:[#allocation2 + $0x14] sm:$0xf] %vm264_vm1, %v258_v9  ;;  %360 = vrot.lane.b32.xlu1 %v356_v10, %s785_s7  ;;  %343 = vrot.lane.b32.xlu2 %v356_v10, %s786_s8 }
  0x98   : > { %326 = vrot.lane.b32.xlu0 %v356_v10, %s787_s9 }
  0x9d   : > { %v302_v11 = vld [vmem:[#allocation2 + $0xc] sm:$0xff] }
  0x9e   : > { %v357_v12 = vld [vmem:[#allocation2 + $0x10] sm:$0xff] }
  0x9f   : > { %362 = vrot.lane.b32.xlu1 %v357_v12, %s785_s7  ;;  %345 = vrot.lane.b32.xlu2 %v357_v12, %s786_s8  ;;  %s461_s7 = scalar_lea.sflag [#allocation5], %s217_s23  ;;  %s719_s8 = sshra.s32 %s479_s6, 4  ;;  %s720_s8 = int_to_ptr.hbm [resolvable:$true] %s719_s8 }
  0xa0   : > { %307 = vrot.lane.b32.xlu0 %v302_v11, %s788_s10  ;;  %s721_s15 = scalar_lea.hbm %s720_s8, 16  ;;  %p726_p1 = scmp.lt.s32.totalorder %s720_s8, %s939_s3 }
  0xa1   : > { %p722_p12 = scmp.ne.s32.totalorder %s720_s8, %s721_s15 }
  0xa3   : > { %p723_p13 = pnand %p722_p12, %p853_p4 }
  0xa5   : > { %p724_p0 = pneg %p723_p13 }
  0xa7   : > { %328 = vrot.lane.b32.xlu1 %v357_v12, %s787_s9  ;;  %305 = vrot.lane.b32.xlu2 %v301_v13, %s788_s10 }
  0xa8   : > { %271 = vrot.lane.b32.xlu0 %v301_v13, %s789_s11 }
  0xaf   : > { %290 = vrot.lane.b32.xlu2 %v302_v11, %s790_s18  ;;  %288 = vrot.lane.b32.xlu1 %v301_v13, %s790_s18 }
  0xb7   : > { %273 = vrot.lane.b32.xlu1 %v302_v11, %s789_s11  ;;  %s725_s11 = scalar_lea.hbm %s939_s3, 32 }
  0xb8   : > { %p727_p2 = scmp.lt.s32.totalorder %s725_s11, %s721_s15 }
  0xba   : > { %p728_p3 = por %p727_p2, %p726_p1 }
  0xbc   : > { %p729_p5 = pnand %p728_p3, %p724_p0 }
  0xf1   : > { %v344_v14 = vpop.permute.xlu2 %343 }
  0xf2   : > { %v347_v15 = vrot.slane %v344_v14, 4 }
  0xf4   : > { %v350_v16 = vsel %vm349_vm2, %v344_v14, %v347_v15 }
  0xf5   : > { %354 = vst [vmem:[#allocation3 + $0x28] sm:$0xf] %v350_v16 }
  0xf9   : > { %v346_v17 = vpop.permute.xlu2 %345 }
  0xfa   : > { %v348_v18 = vrot.slane %v346_v17, 4 }
  0xfc   : > { %v351_v19 = vsel %vm349_vm2, %v346_v17, %v348_v18 }
  0xfd   : > { %355 = vst [vmem:[#allocation3 + $0x2c] sm:$0xf] %v351_v19 }
 0x101   : > { %v306_v20 = vpop.permute.xlu2 %305 }
 0x102   : > { %v309_v21 = vrot.slane %v306_v20, 4 }
 0x104   : > { %v312_v24 = vsel %vm311_vm3, %v306_v20, %v309_v21  ;;  %v639_v47 = vld [vmem:[#allocation3 + $0x28] sm:$0xff] }
 0x105   : > { %316 = vst [vmem:[#allocation3 + $0x10] sm:$0xf] %v312_v24 }
 0x109   : > { %v361_v25 = vpop.permute.xlu1 %360  ;;  %v291_v26 = vpop.permute.xlu2 %290 }
 0x10a   : > { %v364_v27 = vrot.slane %v361_v25, 4  ;;  %v327_v28 = vpop.permute.xlu0 %326  ;;  %v293_v29 = vrot.slane %v291_v26, 4 }
 0x10b   : > { %v330_v30 = vrot.slane %v327_v28, 4 }
 0x10c   : > { %v367_v31 = vsel %vm366_vm4, %v361_v25, %v364_v27  ;;  %v296_v32 = vsel %vm294_vm5, %v291_v26, %v293_v29 }
 0x10d   : > { %371 = vst [vmem:[#allocation3 + $0x30] sm:$0xf] %v367_v31  ;;  %v333_v33 = vsel %vm332_vm6, %v327_v28, %v330_v30 }
 0x10e   : > { %337 = vst [vmem:[#allocation3 + $0x20] sm:$0xf] %v333_v33 }
 0x10f   : > { %300 = vst [vmem:[#allocation3 + $0xc] sm:$0xf] %v296_v32 }
 0x111   : > { %v363_v34 = vpop.permute.xlu1 %362 }
 0x112   : > { %v365_v35 = vrot.slane %v363_v34, 4  ;;  %v308_v36 = vpop.permute.xlu0 %307 }
 0x113   : > { %v310_v37 = vrot.slane %v308_v36, 4 }
 0x114   : > { %v368_v38 = vsel %vm366_vm4, %v363_v34, %v365_v35 }
 0x115   : > { %372 = vst [vmem:[#allocation3 + $0x34] sm:$0xf] %v368_v38  ;;  %v313_v39 = vsel %vm311_vm3, %v308_v36, %v310_v37 }
 0x116   : > { %317 = vst [vmem:[#allocation3 + $0x14] sm:$0xf] %v313_v39 }
 0x119   : > { %v329_v40 = vpop.permute.xlu1 %328 }
 0x11a   : > { %v331_v41 = vrot.slane %v329_v40, 4  ;;  %v272_v42 = vpop.permute.xlu0 %271 }
 0x11b   : > { %v275_v43 = vrot.slane %v272_v42, 4 }
 0x11c   : > { %v334_v44 = vsel %vm332_vm6, %v329_v40, %v331_v41  ;;  %v640_v45 = vld [vmem:[#allocation3 + $0x30] sm:$0xff] }
 0x11d   : > { %338 = vst [vmem:[#allocation3 + $0x24] sm:$0xf] %v334_v44  ;;  %v278_v46 = vsel %vm277_vm7, %v272_v42, %v275_v43  ;;  %443 = vmatpush.bf16.msra.mxu0 %v640_v45  ;;  %v636_v56 = vld [vmem:[#allocation3 + $0x10] sm:$0xff] }
 0x11e   : > { %282 = vst [vmem:[#allocation3] sm:$0xf] %v278_v46 }
 0x121   : > { %v289_v48 = vpop.permute.xlu1 %288  ;;  %444 = vmatpush.bf16.msra.mxu0 %v639_v47 }
 0x122   : > { %v292_v49 = vrot.slane %v289_v48, 4 }
 0x124   : > { %v295_v50 = vsel %vm294_vm5, %v289_v48, %v292_v49  ;;  %v638_v51 = vld [vmem:[#allocation3 + $0x20] sm:$0xff] }
 0x125   : > { %299 = vst [vmem:[#allocation3 + $0x8] sm:$0xf] %v295_v50  ;;  %445 = vmatpush.bf16.msra.mxu0 %v638_v51 }
 0x129   : > { %v274_v53 = vpop.permute.xlu1 %273  ;;  %446 = vmatpush.bf16.msra.mxu0 %v637_v52 }
 0x12a   : > { %v276_v54 = vrot.slane %v274_v53, 4 }
 0x12c   : > { %v279_v55 = vsel %vm277_vm7, %v274_v53, %v276_v54  ;;  %v635_v57 = vld [vmem:[#allocation3 + $0x8] sm:$0xff] }
 0x12d   : > { %283 = vst [vmem:[#allocation3 + $0x4] sm:$0xf] %v279_v55  ;;  %447 = vmatpush.bf16.msra.mxu0 %v636_v56 }
 0x131   : > { %448 = vmatpush.bf16.msra.mxu0 %v635_v57 }
 0x134   : > { %v634_v58 = vld [vmem:[#allocation3] sm:$0xff] }
 0x135   : > { %449 = vmatpush.bf16.msra.mxu0 %v634_v58 }
 0x138   : > { %625 = vmatmul.msk.bf16.vlgmr.msra.gmra.mxu0 %vm438_vm8, %v633_v59 }
 0x1b5   : > { %v451_v60 = vpop.f32.mrf.mxu0 }
 0x1b6   : > { %v456_v61 = vadd.f32 %v451_v60, %v876_v1 }
 0x1b8   : > { %458 = vst [vmem:[%s219_s28] sm:$0xff] %v456_v61 }
 0x1bd   : > { %v453_v62 = vpop.f32.mrf.mxu0 }
 0x1be   : > { %v457_v63 = vadd.f32 %v453_v62, %v878_v3 }
 0x1c0   : > { %459 = vst [vmem:[%s219_s28 + $0x8] sm:$0xff] %v457_v63 }
 0x1c1   : > { %732 = shalt.err (!%p729_p5)
}
 0x1c2   : > { %s791_s21 = smov 128   ;;  %s792_s23 = smov 8  }
 0x1c3   : > { %642 = dma.vmem_to_hbm [thread:$0]  (%p853_p4), %s477_s5, 256, %s479_s6, %s461_s7, %s791_s21, %s791_s21, %s792_s23  }
 0x1c4 PF: > { %p648_p6 = scmp.ge.s32.totalorder %s783_s17, 2  ;;  %s493_s26 = sand.u32 1, %s763_s12  }
 0x1c5   : > { %s494_s27 = scalar_lea.sflag [#allocation5], %s493_s26 }
 0x1c6   : > { %p645_p7 = pnand %p648_p6, %p860_p8 }
 0x1c8   : > { %p646_p9 = pneg %p645_p7 }
 0x1ca   : > { %758 = dma.done.wait (%p646_p9), %s494_s27, 256  }
 0x1cb   : > { %760 = vsyncadd (%p646_p9), %s494_s27, 4294967040  ;;  %s16_s17 = sadd.s32 1, %s783_s17   ;;  %s942_s12 = smov %s767_s13 }
 0x1cc   : > { %p13_p10 = scmp.ge.s32.totalorder %s16_s17, 4   ;;  %s943_s13 = smov %s771_s14 }
 0x1cd   : > { %s944_s14 = smov %s866_s25  ;;  %s945_s15 = smov %s779_s16 }
 0x1ce   : > { %s946_s16 = smov %s948_s20  ;;  %15 = sbr.rel (!%p13_p10) target bundleno = 4 (0x4), region = 74 }
 0x1d3   :  { %500 = vsyncpa [#allocation5], 1 }
 0x1d4   :  { %502 = vsyncpa [#allocation5 + $0x1], 1 }

</bundles_post_ra>
